<compile_context>
chip_gen: v6e
topology: v6e:2x2x1
jax: 0.10.0
libtpu: 0.0.40
codegen_flags: <defaults>
</compile_context>

<pallas_src>
import jax
import jax.numpy as jnp
from jax import lax
from jax.experimental import pallas as pl
from jax.experimental.pallas import tpu as pltpu


def rnn_head_kernel(ids_ref, p_ref, whh_ref, b_ref, wout_ref, bout_ref, out_ref):
    """Fused embedding-gather+input-projection, RNN recurrence, linear head.

    ids_ref  : (seq*batch, 1) int32   token ids, time-major (row r = t*batch + b)
    p_ref    : (vocab_pad, dim)       P = emb @ W_ih^T, zero-padded rows
    whh_ref  : (dim, dim)             W_hh^T
    b_ref    : (1, dim)               b_ih + b_hh
    wout_ref : (dim, n_pad)           W_lin^T zero-padded to 128 lanes
    bout_ref : (1, n_pad)             b_lin   zero-padded to 128 lanes
    out_ref  : (batch, n_pad)         lane-dense logits (unmasked store)
    """
    sb = ids_ref.shape[0]
    vocab_pad, dim = p_ref.shape
    batch = out_ref.shape[0]
    seq = sb // batch

    # ---- fused gather + input projection: one MXU matmul ----
    # x_proj[r] = emb[ids[r]] @ W_ih^T + (b_ih + b_hh)   (exact row selection:
    # one-hot is 0/1, precision=HIGHEST reconstructs the f32 P rows exactly).
    ids = ids_ref[...]                                          # (sb, 1) int32
    vids = lax.broadcasted_iota(jnp.int32, (sb, vocab_pad), 1)  # (sb, vocab_pad)
    onehot = (vids == ids).astype(jnp.float32)                  # (sb, vocab_pad)
    x_proj = jnp.dot(onehot, p_ref[...],
                     preferred_element_type=jnp.float32,
                     precision=lax.Precision.HIGHEST) + b_ref[...]  # (sb, dim)

    whh = whh_ref[...]                                          # loaded once

    # ---- serial recurrence: h carried in vregs; t = 0 skips h@W_hh (h0 == 0)
    h = jnp.tanh(x_proj[:batch, :])
    if seq <= 16:
        # Fully unrolled: static, sublane-aligned slices of x_proj.
        for t in range(1, seq):
            xp_t = x_proj[t * batch:(t + 1) * batch, :]
            h = jnp.tanh(xp_t + jnp.dot(h, whh, preferred_element_type=jnp.float32))
    else:
        # Bounded live ranges for long sequences, LLO still sees the body.
        def body(t, h_c):
            xp_t = lax.dynamic_slice_in_dim(x_proj, t * batch, batch, axis=0)
            return jnp.tanh(xp_t + jnp.dot(h_c, whh, preferred_element_type=jnp.float32))
        h = lax.fori_loop(1, seq, body, h, unroll=True)

    # ---- lane-dense linear head ----
    logits = jnp.dot(h, wout_ref[...], preferred_element_type=jnp.float32) + bout_ref[...]
    out_ref[...] = logits.astype(out_ref.dtype)


def prepare_params(params):
    """One-time parameter preparation (cache the result; not per forward call)."""
    emb = params["embedding"]                          # (vocab, dim)
    vocab, dim = emb.shape
    n_cls = params["b_out"].shape[0]
    vocab_pad = 8 * (-(-vocab // 8))                   # sublane-aligned contraction
    n_pad = 128 * (-(-n_cls // 128))                   # lane-dense head width (>=128)

    p = emb @ params["w_ih"].T                         # (vocab, dim): gather+proj table
    p_pad = jnp.zeros((vocab_pad, dim), jnp.float32).at[:vocab, :].set(p)
    whh_T = params["w_hh"].T                           # (dim, dim)
    bias = (params["b_ih"] + params["b_hh"])[None, :]  # (1, dim)
    wout_T = jnp.zeros((dim, n_pad), jnp.float32).at[:, :n_cls].set(params["w_out"].T)
    bout = jnp.zeros((1, n_pad), jnp.float32).at[:, :n_cls].set(params["b_out"][None, :])
    return {"p": p_pad, "whh": whh_T, "b": bias, "wout": wout_T, "bout": bout,
            "n_cls": n_cls, "n_pad": n_pad}


def torch_model_forward(x_idx, prepped):
    """x_idx: (batch, seq) int token ids. Returns logits (batch, n_cls)."""
    batch, seq = x_idx.shape
    n_cls = prepped["n_cls"]
    n_pad = prepped["n_pad"]

    # Tiny int glue: time-major flatten of token ids (row r = t*batch + b).
    ids = x_idx.astype(jnp.int32).T.reshape(seq * batch, 1)

    vmem = pl.BlockSpec(memory_space=pltpu.MemorySpace.VMEM)
    padded = pl.pallas_call(
        rnn_head_kernel,
        out_shape=jax.ShapeDtypeStruct((batch, n_pad), jnp.float32),
        in_specs=[vmem] * 6,
        out_specs=vmem,
    )(ids, prepped["p"], prepped["whh"], prepped["b"], prepped["wout"], prepped["bout"])
    # TODO(synk): for large batch on v7x, add a batch grid axis with
    # dimension_semantics=("parallel",) so both TensorCores are used.
    return padded[:, :n_cls]


def init_params(key, vocab_size, dim, n_cls=5):
    ks = jax.random.split(key, 7)
    scale = 1.0 / jnp.sqrt(dim)
    return {
        "embedding": jax.random.normal(ks[0], (vocab_size, dim), jnp.float32),
        "w_ih": jax.random.uniform(ks[1], (dim, dim), jnp.float32, -scale, scale),
        "w_hh": jax.random.uniform(ks[2], (dim, dim), jnp.float32, -scale, scale),
        "b_ih": jax.random.uniform(ks[3], (dim,), jnp.float32, -scale, scale),
        "b_hh": jax.random.uniform(ks[4], (dim,), jnp.float32, -scale, scale),
        "w_out": jax.random.uniform(ks[5], (n_cls, dim), jnp.float32, -scale, scale),
        "b_out": jax.random.uniform(ks[6], (n_cls,), jnp.float32, -scale, scale),
    }


def _reference_forward(x_idx, params):
    """Pure-JAX reference mirroring the PyTorch module."""
    xe = jnp.take(params["embedding"], x_idx, axis=0)      # (batch, seq, dim)
    batch, seq, dim = xe.shape
    h = jnp.zeros((batch, dim), jnp.float32)
    for t in range(seq):
        h = jnp.tanh(xe[:, t, :] @ params["w_ih"].T + params["b_ih"]
                     + h @ params["w_hh"].T + params["b_hh"])
    return h @ params["w_out"].T + params["b_out"]


if __name__ == "__main__":
    key = jax.random.PRNGKey(0)
    k_param, k_x = jax.random.split(key)

    vocab_size, dim, batch, seq = 30, 32, 8, 8
    params = init_params(k_param, vocab_size, dim)
    x_idx = jax.random.randint(k_x, (batch, seq), 0, vocab_size, dtype=jnp.int32)

    prepped = prepare_params(params)        # one-time prep, reused across calls
    logits = torch_model_forward(x_idx, prepped)
    logits = jax.block_until_ready(logits)

    ref = _reference_forward(x_idx, params)
    assert logits.shape == (batch, 5)
    assert jnp.allclose(logits, ref, atol=1e-4, rtol=1e-4)

    print("KERNEL_OK")
</pallas_src>

<mosaic_0001>
module attributes {stable_mosaic.version = 11 : i64} {
  func.func @rnn_head_kernel(%arg0: memref<64x1xi32, #tpu.memory_space<vmem>>, %arg1: memref<32x32xf32, #tpu.memory_space<vmem>>, %arg2: memref<32x32xf32, #tpu.memory_space<vmem>>, %arg3: memref<1x32xf32, #tpu.memory_space<vmem>>, %arg4: memref<32x128xf32, #tpu.memory_space<vmem>>, %arg5: memref<1x128xf32, #tpu.memory_space<vmem>>, %arg6: memref<8x128xf32, #tpu.memory_space<vmem>>) attributes {dimension_semantics = [], scalar_prefetch = 0 : i64, scratch_operands = 0 : i64, tpu.core_type = #tpu.core_type<tc>} {
    %c0 = arith.constant 0 : index
    %c0_0 = arith.constant 0 : index
    %0 = vector.load %arg0[%c0, %c0_0] : memref<64x1xi32, #tpu.memory_space<vmem>>, vector<64x1xi32>
    %1 = tpu.iota {dimensions = array<i32: 1>} : vector<64x32xi32>
    %2 = vector.broadcast %0 : vector<64x1xi32> to vector<64x32xi32>
    %3 = arith.cmpi eq, %1, %2 : vector<64x32xi32>
    %4 = arith.extui %3 : vector<64x32xi1> to vector<64x32xi32>
    %5 = arith.sitofp %4 : vector<64x32xi32> to vector<64x32xf32>
    %c0_1 = arith.constant 0 : index
    %c0_2 = arith.constant 0 : index
    %6 = vector.load %arg1[%c0_1, %c0_2] : memref<32x32xf32, #tpu.memory_space<vmem>>, vector<32x32xf32>
    %cst = arith.constant dense<0.000000e+00> : vector<64x32xf32>
    %7 = tpu.matmul %5, %6, %cst {dimension_numbers = #tpu.dot_dimension_numbers<[1], [0], [0], [1], [0, 0, 1, 1], [], []>, precision = #tpu.contract_precision<fp32>} : vector<64x32xf32>, vector<32x32xf32>, vector<64x32xf32> -> vector<64x32xf32>
    %c0_3 = arith.constant 0 : index
    %c0_4 = arith.constant 0 : index
    %8 = vector.load %arg3[%c0_3, %c0_4] : memref<1x32xf32, #tpu.memory_space<vmem>>, vector<1x32xf32>
    %9 = vector.broadcast %8 : vector<1x32xf32> to vector<64x32xf32>
    %10 = arith.addf %7, %9 : vector<64x32xf32>
    %c0_5 = arith.constant 0 : index
    %c0_6 = arith.constant 0 : index
    %11 = vector.load %arg2[%c0_5, %c0_6] : memref<32x32xf32, #tpu.memory_space<vmem>>, vector<32x32xf32>
    %12 = vector.extract_strided_slice %10 {offsets = [0, 0], sizes = [8, 32], strides = [1, 1]} : vector<64x32xf32> to vector<8x32xf32>
    %13 = math.tanh %12 : vector<8x32xf32>
    %14 = vector.extract_strided_slice %10 {offsets = [8, 0], sizes = [8, 32], strides = [1, 1]} : vector<64x32xf32> to vector<8x32xf32>
    %cst_7 = arith.constant dense<0.000000e+00> : vector<8x32xf32>
    %15 = tpu.matmul %13, %11, %cst_7 {dimension_numbers = #tpu.dot_dimension_numbers<[1], [0], [0], [1], [0, 0, 1, 1], [], []>} : vector<8x32xf32>, vector<32x32xf32>, vector<8x32xf32> -> vector<8x32xf32>
    %16 = arith.addf %14, %15 : vector<8x32xf32>
    %17 = math.tanh %16 : vector<8x32xf32>
    %18 = vector.extract_strided_slice %10 {offsets = [16, 0], sizes = [8, 32], strides = [1, 1]} : vector<64x32xf32> to vector<8x32xf32>
    %cst_8 = arith.constant dense<0.000000e+00> : vector<8x32xf32>
    %19 = tpu.matmul %17, %11, %cst_8 {dimension_numbers = #tpu.dot_dimension_numbers<[1], [0], [0], [1], [0, 0, 1, 1], [], []>} : vector<8x32xf32>, vector<32x32xf32>, vector<8x32xf32> -> vector<8x32xf32>
    %20 = arith.addf %18, %19 : vector<8x32xf32>
    %21 = math.tanh %20 : vector<8x32xf32>
    %22 = vector.extract_strided_slice %10 {offsets = [24, 0], sizes = [8, 32], strides = [1, 1]} : vector<64x32xf32> to vector<8x32xf32>
    %cst_9 = arith.constant dense<0.000000e+00> : vector<8x32xf32>
    %23 = tpu.matmul %21, %11, %cst_9 {dimension_numbers = #tpu.dot_dimension_numbers<[1], [0], [0], [1], [0, 0, 1, 1], [], []>} : vector<8x32xf32>, vector<32x32xf32>, vector<8x32xf32> -> vector<8x32xf32>
    %24 = arith.addf %22, %23 : vector<8x32xf32>
    %25 = math.tanh %24 : vector<8x32xf32>
    %26 = vector.extract_strided_slice %10 {offsets = [32, 0], sizes = [8, 32], strides = [1, 1]} : vector<64x32xf32> to vector<8x32xf32>
    %cst_10 = arith.constant dense<0.000000e+00> : vector<8x32xf32>
    %27 = tpu.matmul %25, %11, %cst_10 {dimension_numbers = #tpu.dot_dimension_numbers<[1], [0], [0], [1], [0, 0, 1, 1], [], []>} : vector<8x32xf32>, vector<32x32xf32>, vector<8x32xf32> -> vector<8x32xf32>
    %28 = arith.addf %26, %27 : vector<8x32xf32>
    %29 = math.tanh %28 : vector<8x32xf32>
    %30 = vector.extract_strided_slice %10 {offsets = [40, 0], sizes = [8, 32], strides = [1, 1]} : vector<64x32xf32> to vector<8x32xf32>
    %cst_11 = arith.constant dense<0.000000e+00> : vector<8x32xf32>
    %31 = tpu.matmul %29, %11, %cst_11 {dimension_numbers = #tpu.dot_dimension_numbers<[1], [0], [0], [1], [0, 0, 1, 1], [], []>} : vector<8x32xf32>, vector<32x32xf32>, vector<8x32xf32> -> vector<8x32xf32>
    %32 = arith.addf %30, %31 : vector<8x32xf32>
    %33 = math.tanh %32 : vector<8x32xf32>
    %34 = vector.extract_strided_slice %10 {offsets = [48, 0], sizes = [8, 32], strides = [1, 1]} : vector<64x32xf32> to vector<8x32xf32>
    %cst_12 = arith.constant dense<0.000000e+00> : vector<8x32xf32>
    %35 = tpu.matmul %33, %11, %cst_12 {dimension_numbers = #tpu.dot_dimension_numbers<[1], [0], [0], [1], [0, 0, 1, 1], [], []>} : vector<8x32xf32>, vector<32x32xf32>, vector<8x32xf32> -> vector<8x32xf32>
    %36 = arith.addf %34, %35 : vector<8x32xf32>
    %37 = math.tanh %36 : vector<8x32xf32>
    %38 = vector.extract_strided_slice %10 {offsets = [56, 0], sizes = [8, 32], strides = [1, 1]} : vector<64x32xf32> to vector<8x32xf32>
    %cst_13 = arith.constant dense<0.000000e+00> : vector<8x32xf32>
    %39 = tpu.matmul %37, %11, %cst_13 {dimension_numbers = #tpu.dot_dimension_numbers<[1], [0], [0], [1], [0, 0, 1, 1], [], []>} : vector<8x32xf32>, vector<32x32xf32>, vector<8x32xf32> -> vector<8x32xf32>
    %40 = arith.addf %38, %39 : vector<8x32xf32>
    %41 = math.tanh %40 : vector<8x32xf32>
    %c0_14 = arith.constant 0 : index
    %c0_15 = arith.constant 0 : index
    %42 = vector.load %arg4[%c0_14, %c0_15] : memref<32x128xf32, #tpu.memory_space<vmem>>, vector<32x128xf32>
    %cst_16 = arith.constant dense<0.000000e+00> : vector<8x128xf32>
    %43 = tpu.matmul %41, %42, %cst_16 {dimension_numbers = #tpu.dot_dimension_numbers<[1], [0], [0], [1], [0, 0, 1, 1], [], []>} : vector<8x32xf32>, vector<32x128xf32>, vector<8x128xf32> -> vector<8x128xf32>
    %c0_17 = arith.constant 0 : index
    %c0_18 = arith.constant 0 : index
    %44 = vector.load %arg5[%c0_17, %c0_18] : memref<1x128xf32, #tpu.memory_space<vmem>>, vector<1x128xf32>
    %45 = vector.broadcast %44 : vector<1x128xf32> to vector<8x128xf32>
    %46 = arith.addf %43, %45 : vector<8x128xf32>
    %c0_19 = arith.constant 0 : index
    %c0_20 = arith.constant 0 : index
    %47 = vector.load %arg6[%c0_19, %c0_20] : memref<8x128xf32, #tpu.memory_space<vmem>>, vector<8x128xf32>
    tpu.vector_store %arg6[%c0_19, %c0_20], %46 {strides = array<i32>} : memref<8x128xf32, #tpu.memory_space<vmem>>, vector<8x128xf32>,
    return
  }
}

</mosaic_0001>

<bundles_post_ra>
// kernel: tpu_custom_call.1
= control target key start
LH: loop header
LB: loop body
LE: loop exit
PB: predicated region body
PF: predicated region fallthrough
CT: control target
= control target key end

     0   :  { %11 = vsyncpa [#allocation3], 0  ;;  %s2399_s0 = inlined_call_operand.vmem [shape: s32[64,1], index: 0, kind: input, shape index: {}]   ;;  %s2400_s1 = inlined_call_operand.vmem [shape: f32[32,32], index: 1, kind: input, shape index: {}]   ;;  %s2401_s2 = inlined_call_operand.vmem [shape: f32[32,32], index: 2, kind: input, shape index: {}]   ;;  %s2402_s3 = inlined_call_operand.vmem [shape: f32[1,32], index: 3, kind: input, shape index: {}]   ;;  %s2403_s4 = inlined_call_operand.hbm [shape: f32[32,128], index: 4, kind: input, shape index: {}]   ;;  %s2404_s5 = inlined_call_operand.vmem [shape: f32[1,128], index: 5, kind: input, shape index: {}]   ;;  %s2405_s6 = inlined_call_operand.hbm [shape: f32[8,128], index: 6, kind: output, shape index: {}]  }
   0x1   :  { %12 = vsyncpa [#allocation4], 0  ;;  %s1979_s21 = smov [#allocation2]  }
   0x2   :  { %s26_s22 = sshll.u32 %s1979_s21, 4  ;;  %s27_s22 = int_to_ptr.vmem [resolvable:$true] %s26_s22 }
   0x3   :  { %s1943_s23 = scalar_lea.vmem %s27_s22, 512  ;;  %p1948_p1 = scmp.lt.s32.totalorder %s27_s22, %s27_s22 }
   0x4   :  { %p1944_p0 = scmp.ne.s32.totalorder %s27_s22, %s1943_s23  ;;  %p1949_p2 = scmp.lt.s32.totalorder %s1943_s23, %s1943_s23 }
   0x6   :  { %p1950_p3 = por %p1949_p2, %p1948_p1 }
   0x8   :  { %p1951_p4 = pnand %p1950_p3, %p1944_p0 }
   0xa   :  { %1954 = shalt.err (!%p1951_p4)
}
   0xb   :  { %s1980_s24 = smov 128   ;;  %s1981_s25 = smov 8  }
   0xc   :  { %32 = dma.hbm_to_vmem [thread:$0]  %s2403_s4, 512, %s27_s22, [#allocation3], %s1980_s24, %s1980_s24, %s1981_s25  }
   0xd   :  { %1975 = dma.done.wait [#allocation3], 512  }
   0xe   :  { %1976 = vsyncadd [#allocation3], 4294966784  ;;  %v1982_v0 = vmov 0   ;;  %v40_v1 = vld [vmem:[%s2399_s0 + $0x10] sm:$0xff]  ;;  %v38_v2 = vld [vmem:[%s2399_s0] sm:$0xff]  ;;  %v46_v33 = vlaneseq  ;;  %vm107_vm0 = vcmask 261120  }
   0xf   :  { %1918 = vset.pattern.permute.xlu1 %v1982_v0  ;;  %1917 = vset.pattern.permute.xlu0 %v1982_v0  ;;  %v41_v3 = vld [vmem:[%s2399_s0 + $0x18] sm:$0xff]  ;;  %v39_v4 = vld [vmem:[%s2399_s0 + $0x8] sm:$0xff]  ;;  %v98_v7 = vld [vmem:[%s2400_s1 + $0x10] sm:$0xff]  ;;  %v1983_v37 = vmov 0.0   ;;  %vm1984_vm9 = vmmov 0   ;;  %s1985_s10 = smov [#allocation5]  }
  0x10   :  { %55 = vperm.xlu1 %1918, %v40_v1   ;;  %49 = vperm.xlu0 %1917, %v38_v2   ;;  %v99_v5 = vld [vmem:[%s2400_s1 + $0x18] sm:$0xff]  ;;  %v97_v8 = vld [vmem:[%s2400_s1 + $0x8] sm:$0xff]  ;;  %v96_v9 = vld [vmem:[%s2400_s1] sm:$0xff]  ;;  %v2050_v10 = vand.u32 4294901760, %v98_v7  ;;  %v47_v34 = vand.u32 127, %v46_v33  ;;  %s1539_s11 = sshll.u32 %s1985_s10, 4  ;;  %s1540_s11 = int_to_ptr.vmem [resolvable:$true] %s1539_s11 }
  0x11   :  { %v2039_v6 = vand.u32 4294901760, %v99_v5  ;;  %v2052_v11 = vand.u32 4294901760, %v97_v8  ;;  %v2054_v12 = vand.u32 4294901760, %v96_v9  ;;  %v43_v14 = vld [vmem:[%s2399_s0 + $0x28] sm:$0xff]  ;;  %v42_v15 = vld [vmem:[%s2399_s0 + $0x20] sm:$0xff]  ;;  %v45_v24 = vld [vmem:[%s2399_s0 + $0x38] sm:$0xff]  ;;  %p1960_p6 = scmp.lt.s32.totalorder %s1540_s11, %s1540_s11 }
  0x12   :  { %v2066_v16 = vsub.f32 %v98_v7, %v2050_v10  ;;  %v44_v25 = vld [vmem:[%s2399_s0 + $0x30] sm:$0xff]  ;;  %s1955_s12 = scalar_lea.vmem %s1540_s11, 128 }
  0x13   :  { %v2057_v13 = vsub.f32 %v99_v5, %v2039_v6  ;;  %v2069_v17 = vsub.f32 %v97_v8, %v2052_v11  ;;  %v2072_v18 = vsub.f32 %v96_v9, %v2054_v12  ;;  %1702 = vmatprep.subr.mxu0 %v2039_v6  ;;  %p1956_p5 = scmp.ne.s32.totalorder %s1540_s11, %s1955_s12  ;;  %p1961_p7 = scmp.lt.s32.totalorder %s1955_s12, %s1955_s12 }
  0x14   :  { %58 = vperm.xlu1 %1918, %v41_v3   ;;  %52 = vperm.xlu0 %1917, %v39_v4   ;;  %v2080_v20 = vand.u32 4294901760, %v2066_v16 }
  0x15   :  { %v2076_v19 = vand.u32 4294901760, %v2057_v13  ;;  %1703 = vmatpush3.msra.mxu0 %v2039_v6  ;;  %v2083_v21 = vand.u32 4294901760, %v2069_v17  ;;  %v2086_v22 = vand.u32 4294901760, %v2072_v18  ;;  %p1962_p8 = por %p1961_p7, %p1960_p6 }
  0x16   :  { %1704 = vmatprep.subr.mxu0 %v2050_v10  ;;  %v316_v26 = vsub.f32 %v2066_v16, %v2080_v20 }
  0x17   :  { %v309_v23 = vsub.f32 %v2057_v13, %v2076_v19  ;;  %v323_v27 = vsub.f32 %v2069_v17, %v2083_v21  ;;  %1705 = vmatpush3.msra.mxu0 %v2050_v10  ;;  %v330_v30 = vsub.f32 %v2072_v18, %v2086_v22  ;;  %p1963_p9 = pnand %p1962_p8, %p1956_p5 }
  0x18   :  { %64 = vperm.xlu1 %1918, %v43_v14   ;;  %61 = vperm.xlu0 %1917, %v42_v15   ;;  %v317_v29 = vand.u32 4294901760, %v316_v26 }
  0x19   :  { %v310_v28 = vand.u32 4294901760, %v309_v23  ;;  %1706 = vmatprep.subr.mxu0 %v2052_v11  ;;  %v324_v31 = vand.u32 4294901760, %v323_v27  ;;  %v331_v32 = vand.u32 4294901760, %v330_v30 }
  0x1a   :  { %1707 = vmatpush3.msra.mxu0 %v2052_v11 }
  0x1b   :  { %1722 = vmatprep.subr.mxu1 %v310_v28  ;;  %1708 = vmatprep.subr.mxu0 %v2054_v12 }
  0x1c   :  { %70 = vperm.xlu1 %1918, %v45_v24   ;;  %67 = vperm.xlu0 %1917, %v44_v25  }
  0x1d   :  { %1723 = vmatpush3.msra.mxu1 %v310_v28  ;;  %1709 = vmatpush3.msra.mxu0 %v2054_v12 }
  0x1e   :  { %1724 = vmatprep.subr.mxu1 %v317_v29  ;;  %1742 = vmatprep.subr.mxu0 %v2057_v13 }
  0x1f   :  { %1725 = vmatpush3.msra.mxu1 %v317_v29 }
  0x20   :  { %1726 = vmatprep.subr.mxu1 %v324_v31 }
  0x21   :  { %1727 = vmatpush3.msra.mxu1 %v324_v31 }
  0x22   :  { %1728 = vmatprep.subr.mxu1 %v331_v32 }
  0x23   :  { %1729 = vmatpush3.msra.mxu1 %v331_v32 }
  0x24   :  { %1762 = vmatprep.subr.mxu1 %v2039_v6 }
  0x8b   :  { %v56_v35 = vpop.permute.xlu1 %55  ;;  %v50_v36 = vpop.permute.xlu0 %49 }
  0x8c   :  { %vm74_vm1 = vcmp.eq.s32.totalorder %v47_v34, %v56_v35  ;;  %vm72_vm2 = vcmp.eq.s32.totalorder %v47_v34, %v50_v36 }
  0x8d   :  { %v2111_v38 = vsel %vm74_vm1, 1.0, %v1983_v37  ;;  %v2114_v39 = vsel %vm72_vm2, 1.0, %v1983_v37 }
  0x8e   :  { %v115_v40 = vsel %vm107_vm0, %v2111_v38, 0  ;;  %1730 = vmatprep.mubr.msk.f32.mxu1 %vm107_vm0, %v2114_v39  ;;  %v109_v41 = vsel %vm107_vm0, %v2114_v39, 0 }
  0x8f   :  { %v2122_v42 = vsub.f32 %v115_v40, %v115_v40  ;;  %v59_v43 = vpop.permute.xlu1 %58  ;;  %v53_v44 = vpop.permute.xlu0 %52  ;;  %v2124_v45 = vsub.f32 %v109_v41, %v109_v41 }
  0x90   :  { %vm75_vm3 = vcmp.eq.s32.totalorder %v47_v34, %v59_v43  ;;  %vm73_vm4 = vcmp.eq.s32.totalorder %v47_v34, %v53_v44 }
  0x91   :  { %v2127_v46 = vsel %vm75_vm3, 1.0, %v1983_v37  ;;  %v2130_v47 = vsel %vm73_vm4, 1.0, %v1983_v37  ;;  %v203_v48 = vand.u32 4294901760, %v2124_v45  ;;  %v223_v51 = vand.u32 4294901760, %v2122_v42 }
  0x92   :  { %v118_v49 = vsel %vm107_vm0, %v2127_v46, 0  ;;  %v112_v50 = vsel %vm107_vm0, %v2130_v47, 0  ;;  %1731 = vmatmul.mubr.msk.f32.vlgmr.msra.gmra.mxu1 %vm107_vm0, %v2130_v47 }
  0x93   :  { %v2140_v52 = vsub.f32 %v118_v49, %v118_v49  ;;  %v2142_v53 = vsub.f32 %v112_v50, %v112_v50  ;;  %v65_v54 = vpop.permute.xlu1 %64  ;;  %1733 = vmatprep.mubr.msk.f32.mxu1 %vm107_vm0, %v2111_v38  ;;  %v62_v55 = vpop.permute.xlu0 %61  ;;  %v204_v56 = vsub.f32 %v2124_v45, %v203_v48  ;;  %1763 = vmatpush3.msra.mxu1 %v2039_v6 }
  0x94   :  { %vm77_vm5 = vcmp.eq.s32.totalorder %v47_v34, %v65_v54  ;;  %vm76_vm6 = vcmp.eq.s32.totalorder %v47_v34, %v62_v55  ;;  %1764 = vmatprep.subr.mxu1 %v2050_v10  ;;  %v224_v63 = vsub.f32 %v2122_v42, %v223_v51 }
  0x95   :  { %v2152_v57 = vsel %vm77_vm5, 1.0, %v1983_v37  ;;  %v2155_v58 = vsel %vm76_vm6, 1.0, %v1983_v37  ;;  %v205_v59 = vand.u32 4294901760, %v204_v56  ;;  %v213_v60 = vand.u32 4294901760, %v2142_v53  ;;  %1765 = vmatpush3.msra.mxu1 %v2050_v10 }
  0x96   :  { %v124_v61 = vsel %vm107_vm0, %v2152_v57, 0  ;;  %v121_v62 = vsel %vm107_vm0, %v2155_v58, 0  ;;  %1734 = vmatmul.mubr.msk.f32.gmra.mxu1 %vm107_vm0, %v2127_v46  ;;  %1766 = vmatprep.subr.mxu1 %v2052_v11  ;;  %v233_v0 = vand.u32 4294901760, %v2140_v52  ;;  %v225_v25 = vand.u32 4294901760, %v224_v63 }
  0x97   :  { %v2170_v1 = vsub.f32 %v124_v61, %v124_v61  ;;  %v2172_v2 = vsub.f32 %v121_v62, %v121_v62  ;;  %v71_v3 = vpop.permute.xlu1 %70  ;;  %1710 = vmatprep.mubr.f32.mxu0 %v205_v59  ;;  %1736 = vmatprep.mubr.msk.f32.mxu1 %vm107_vm0, %v2155_v58  ;;  %v68_v4 = vpop.permute.xlu0 %67  ;;  %v214_v5 = vsub.f32 %v2142_v53, %v213_v60 }
  0x98   :  { %vm79_vm7 = vcmp.eq.s32.totalorder %v47_v34, %v71_v3  ;;  %vm78_vm8 = vcmp.eq.s32.totalorder %v47_v34, %v68_v4  ;;  %v234_v7 = vsub.f32 %v2140_v52, %v233_v0  ;;  %1767 = vmatpush3.msra.mxu1 %v2052_v11 }
  0x99   :  { %v2180_v8 = vsel %vm79_vm7, 1.0, %v1983_v37  ;;  %v2183_v9 = vsel %vm78_vm8, 1.0, %v1983_v37  ;;  %v215_v14 = vand.u32 4294901760, %v214_v5  ;;  %v243_v15 = vand.u32 4294901760, %v2172_v2  ;;  %1768 = vmatprep.subr.mxu1 %v2054_v12 }
  0x9a   :  { %v130_v23 = vsel %vm107_vm0, %v2180_v8, 0  ;;  %v127_v24 = vsel %vm107_vm0, %v2183_v9, 0  ;;  %1737 = vmatmul.mubr.msk.f32.gmra.mxu1 %vm107_vm0, %v2152_v57  ;;  %v253_v26 = vand.u32 4294901760, %v2170_v1  ;;  %v235_v30 = vand.u32 4294901760, %v234_v7 }
  0x9b   :  { %v2194_v27 = vsub.f32 %v130_v23, %v130_v23  ;;  %v262_v28 = vsub.f32 %v127_v24, %v127_v24  ;;  %1711 = vmatmul.mubr.f32.vlgmr.msra.gmra.mxu0 %v215_v14  ;;  %1739 = vmatprep.mubr.msk.f32.mxu1 %vm107_vm0, %v2183_v9  ;;  %v244_v29 = vsub.f32 %v2172_v2, %v243_v15 }
  0x9c   :  { %1743 = vmatpush3.msra.mxu0 %v2057_v13  ;;  %1713 = vmatprep.mubr.f32.mxu0 %v225_v25  ;;  %v254_v32 = vsub.f32 %v2170_v1, %v253_v26 }
  0x9d   :  { %1744 = vmatprep.subr.mxu0 %v2066_v16  ;;  %v245_v31 = vand.u32 4294901760, %v244_v29  ;;  %1769 = vmatpush3.msra.mxu1 %v2054_v12  ;;  %v263_v33 = vand.u32 4294901760, %v262_v28  ;;  %v273_v34 = vand.u32 4294901760, %v2194_v27 }
  0x9e   :  { %1740 = vmatmul.mubr.msk.f32.gmra.mxu1 %vm107_vm0, %v2180_v8  ;;  %1745 = vmatpush3.msra.mxu0 %v2066_v16  ;;  %v255_v35 = vand.u32 4294901760, %v254_v32 }
  0x9f   :  { %1714 = vmatmul.mubr.f32.gmra.mxu0 %v235_v30  ;;  %1770 = vmatprep.mubr.f32.mxu1 %v203_v48  ;;  %v264_v13 = vsub.f32 %v262_v28, %v263_v33  ;;  %v274_v40 = vsub.f32 %v2194_v27, %v273_v34 }
  0xa0   :  { %1716 = vmatprep.mubr.f32.mxu0 %v245_v31  ;;  %1746 = vmatprep.subr.mxu0 %v2069_v17 }
  0xa1   :  { %1747 = vmatpush3.msra.mxu0 %v2069_v17  ;;  %v265_v36 = vand.u32 4294901760, %v264_v13  ;;  %1802 = vmatprep.subr.mxu1 %v2039_v6  ;;  %v275_v16 = vand.u32 4294901760, %v274_v40 }
  0xa2   :  { %1771 = vmatmul.mubr.f32.vlgmr.msra.gmra.mxu1 %v213_v60  ;;  %1748 = vmatprep.subr.mxu0 %v2072_v18 }
  0xa3   :  { %1717 = vmatmul.mubr.f32.gmra.mxu0 %v255_v35  ;;  %1773 = vmatprep.mubr.f32.mxu1 %v223_v51 }
  0xa4   :  { %1719 = vmatprep.mubr.f32.mxu0 %v265_v36  ;;  %1749 = vmatpush3.msra.mxu0 %v2072_v18 }
  0xa5   :  { %1782 = vmatprep.subr.mxu0 %v2076_v19  ;;  %1803 = vmatpush3.msra.mxu1 %v2039_v6  ;;  %v2276_v6 = vld [vmem:[%s2401_s2 + $0x18] sm:$0xff] }
  0xa6   :  { %1774 = vmatmul.mubr.f32.gmra.mxu1 %v233_v0  ;;  %1804 = vmatprep.subr.mxu1 %v2050_v10 }
  0xa7   :  { %1720 = vmatmul.mubr.f32.gmra.mxu0 %v275_v16  ;;  %1776 = vmatprep.mubr.f32.mxu1 %v243_v15 }
  0xa8   :  { %1750 = vmatprep.mubr.f32.mxu0 %v2124_v45  ;;  %1805 = vmatpush3.msra.mxu1 %v2050_v10  ;;  %v2284_v10 = vld [vmem:[%s2401_s2 + $0x10] sm:$0xff] }
  0xa9   :  { %1806 = vmatprep.subr.mxu1 %v2052_v11 }
  0xaa   :  { %1777 = vmatmul.mubr.f32.gmra.mxu1 %v253_v26 }
  0xab   :  { %1751 = vmatmul.mubr.f32.vlgmr.msra.gmra.mxu0 %v2142_v53  ;;  %1779 = vmatprep.mubr.f32.mxu1 %v263_v33 }
  0xac   :  { %1783 = vmatpush3.msra.mxu0 %v2076_v19  ;;  %1753 = vmatprep.mubr.f32.mxu0 %v2122_v42 }
  0xad   :  { %1784 = vmatprep.subr.mxu0 %v2080_v20  ;;  %1807 = vmatpush3.msra.mxu1 %v2052_v11  ;;  %v2294_v11 = vld [vmem:[%s2401_s2 + $0x8] sm:$0xff] }
  0xae   :  { %1780 = vmatmul.mubr.f32.gmra.mxu1 %v273_v34  ;;  %1785 = vmatpush3.msra.mxu0 %v2080_v20 }
  0xaf   :  { %1754 = vmatmul.mubr.f32.gmra.mxu0 %v2140_v52  ;;  %1810 = vmatprep.mubr.msk.f32.mxu1 %vm107_vm0, %v2114_v39 }
  0xb0   :  { %1756 = vmatprep.mubr.f32.mxu0 %v2172_v2  ;;  %1808 = vmatprep.subr.mxu1 %v2054_v12 }
  0xb1   :  { %1809 = vmatpush3.msra.mxu1 %v2054_v12  ;;  %1786 = vmatprep.subr.mxu0 %v2083_v21  ;;  %v2302_v12 = vld [vmem:[%s2401_s2] sm:$0xff] }
  0xb2   :  { %1811 = vmatmul.mubr.msk.f32.vlgmr.msra.gmra.mxu1 %vm107_vm0, %v2130_v47  ;;  %1787 = vmatpush3.msra.mxu0 %v2083_v21  ;;  %v1556_v21 = vld [vmem:[%s2402_s3] ss:$0 sm:$0xff] }
  0xb3   :  { %1757 = vmatmul.mubr.f32.gmra.mxu0 %v2170_v1  ;;  %1813 = vmatprep.mubr.msk.f32.mxu1 %vm107_vm0, %v2111_v38 }
  0xb4   :  { %1759 = vmatprep.mubr.f32.mxu0 %v262_v28  ;;  %1788 = vmatprep.subr.mxu0 %v2086_v22 }
  0xb5   :  { %1789 = vmatpush3.msra.mxu0 %v2086_v22  ;;  %1833 = vmatprep.subr.mxu1 %v1983_v37 }
  0xb6   :  { %1814 = vmatmul.mubr.msk.f32.gmra.mxu1 %vm107_vm0, %v2127_v46  ;;  %1822 = vmatprep.subr.mxu0 %v1983_v37 }
  0xb7   :  { %1760 = vmatmul.mubr.f32.gmra.mxu0 %v2194_v27  ;;  %1816 = vmatprep.mubr.msk.f32.mxu1 %vm107_vm0, %v2155_v58 }
  0xb8   :  { %1790 = vmatprep.mubr.msk.f32.mxu0 %vm107_vm0, %v2114_v39  ;;  %1834 = vmatpush3.msra.mxu1 %v2276_v6 }
  0xb9   :  { %1835 = vmatprep.subr.mxu1 %v1983_v37 }
  0xba   :  { %1817 = vmatmul.mubr.msk.f32.gmra.mxu1 %vm107_vm0, %v2152_v57 }
  0xbb   :  { %1791 = vmatmul.mubr.msk.f32.vlgmr.msra.gmra.mxu0 %vm107_vm0, %v2130_v47  ;;  %1819 = vmatprep.mubr.msk.f32.mxu1 %vm107_vm0, %v2183_v9 }
  0xbc   :  { %1793 = vmatprep.mubr.msk.f32.mxu0 %vm107_vm0, %v2111_v38  ;;  %1823 = vmatpush3.msra.mxu0 %v2276_v6 }
  0xbd   :  { %1824 = vmatprep.subr.mxu0 %v1983_v37  ;;  %1836 = vmatpush3.msra.mxu1 %v2284_v10 }
  0xbe   :  { %1820 = vmatmul.mubr.msk.f32.gmra.mxu1 %vm107_vm0, %v2180_v8  ;;  %1825 = vmatpush3.msra.mxu0 %v2284_v10 }
  0xbf   :  { %1794 = vmatmul.mubr.msk.f32.gmra.mxu0 %vm107_vm0, %v2127_v46  ;;  %1826 = vmatprep.subr.mxu0 %v1983_v37 }
  0xc0   :  { %1796 = vmatprep.mubr.msk.f32.mxu0 %vm107_vm0, %v2155_v58  ;;  %1837 = vmatprep.subr.mxu1 %v1983_v37 }
  0xc1   :  { %1827 = vmatpush3.msra.mxu0 %v2294_v11  ;;  %1838 = vmatpush3.msra.mxu1 %v2294_v11 }
  0xc2   :  { %1828 = vmatprep.subr.mxu0 %v1983_v37  ;;  %1839 = vmatprep.subr.mxu1 %v1983_v37 }
  0xc3   :  { %1797 = vmatmul.mubr.msk.f32.gmra.mxu0 %vm107_vm0, %v2152_v57  ;;  %1840 = vmatpush3.msra.mxu1 %v2302_v12 }
  0xc4   :  { %1799 = vmatprep.mubr.msk.f32.mxu0 %vm107_vm0, %v2183_v9  ;;  %1829 = vmatpush3.msra.mxu0 %v2302_v12 }
  0xc5   :  { %1841 = vmatprep.mubr.msk.f32.mxu1 %vm1984_vm9, %v1983_v37  ;;  %1844 = vmatprep.subr.mxu0 %v1983_v37 }
  0xc6   :  { %1855 = vmatprep.subr.mxu1 %v1983_v37 }
  0xc7   :  { %1800 = vmatmul.mubr.msk.f32.gmra.mxu0 %vm107_vm0, %v2180_v8 }
  0xc8   :  { %1830 = vmatprep.mubr.msk.f32.mxu0 %vm1984_vm9, %v1983_v37 }
 0x152   :  { %v1732_v17 = vpop.f32.mrf.mxu1 }
 0x154   :  { %v368_v18 = vpop.f32.mrf.mxu1 }
 0x156   :  { %v1735_v19 = vpop.f32.mrf.mxu1 }
 0x158   :  { %v380_v20 = vpop.f32.mrf.mxu1 }
 0x15a   :  { %v1738_v22 = vpop.f32.mrf.mxu1 }
 0x15b   :  { %v1712_v38 = vpop.f32.mrf.mxu0 }
 0x15c   :  { %v218_v39 = vadd.f32 %v1712_v38, %v1556_v21  ;;  %v392_v41 = vpop.f32.mrf.mxu1 }
 0x15d   :  { %v207_v42 = vpop.f32.mrf.mxu0 }
 0x15e   :  { %v1741_v43 = vpop.f32.mrf.mxu1  ;;  %v375_v44 = vadd.f32 %v1732_v17, %v218_v39  ;;  %v208_v27 = vadd.f32 %v1556_v21, %v207_v42 }
 0x15f   :  { %v1715_v45 = vpop.f32.mrf.mxu0 }
 0x160   :  { %v238_v46 = vadd.f32 %v1715_v45, %v1556_v21  ;;  %v404_v47 = vpop.f32.mrf.mxu1  ;;  %v369_v35 = vadd.f32 %v368_v18, %v208_v27 }
 0x161   :  { %v227_v48 = vpop.f32.mrf.mxu0 }
 0x162   :  { %v228_v49 = vadd.f32 %v1556_v21, %v227_v48  ;;  %v1772_v50 = vpop.f32.mrf.mxu1  ;;  %v387_v51 = vadd.f32 %v1735_v19, %v238_v46 }
 0x163   :  { %v1718_v52 = vpop.f32.mrf.mxu0 }
 0x164   :  { %v258_v53 = vadd.f32 %v1718_v52, %v1556_v21  ;;  %v616_v54 = vpop.f32.mrf.mxu1  ;;  %v381_v55 = vadd.f32 %v380_v20, %v228_v49 }
 0x165   :  { %v247_v56 = vpop.f32.mrf.mxu0 }
 0x166   :  { %v248_v57 = vadd.f32 %v1556_v21, %v247_v56  ;;  %v1775_v58 = vpop.f32.mrf.mxu1  ;;  %v399_v59 = vadd.f32 %v1738_v22, %v258_v53 }
 0x167   :  { %v1721_v60 = vpop.f32.mrf.mxu0 }
 0x168   :  { %v278_v61 = vadd.f32 %v1721_v60, %v1556_v21  ;;  %v632_v62 = vpop.f32.mrf.mxu1  ;;  %v393_v63 = vadd.f32 %v392_v41, %v248_v57 }
 0x169   :  { %v267_v0 = vpop.f32.mrf.mxu0 }
 0x16a   :  { %v268_v1 = vadd.f32 %v1556_v21, %v267_v0  ;;  %v1778_v2 = vpop.f32.mrf.mxu1  ;;  %v411_v3 = vadd.f32 %v1741_v43, %v278_v61 }
 0x16b   :  { %v1752_v4 = vpop.f32.mrf.mxu0 }
 0x16c   :  { %v498_v5 = vadd.f32 %v1752_v4, %v375_v44  ;;  %v648_v7 = vpop.f32.mrf.mxu1  ;;  %v405_v8 = vadd.f32 %v404_v47, %v268_v1 }
 0x16d   :  { %v490_v9 = vpop.f32.mrf.mxu0 }
 0x16e   :  { %v1781_v14 = vpop.f32.mrf.mxu1  ;;  %v625_v15 = vadd.f32 %v1772_v50, %v498_v5  ;;  %v491_v17 = vadd.f32 %v490_v9, %v369_v35 }
 0x16f   :  { %v1755_v23 = vpop.f32.mrf.mxu0 }
 0x170   :  { %v512_v24 = vadd.f32 %v1755_v23, %v387_v51  ;;  %v664_v25 = vpop.f32.mrf.mxu1  ;;  %v617_v43 = vadd.f32 %v616_v54, %v491_v17  ;;  %v1451_v17 = vld [vmem:[#allocation2 + $0x18] sm:$0xff] }
 0x171   :  { %v504_v26 = vpop.f32.mrf.mxu0 }
 0x172   :  { %v505_v28 = vadd.f32 %v504_v26, %v381_v55  ;;  %v1812_v29 = vpop.f32.mrf.mxu1  ;;  %v641_v30 = vadd.f32 %v1775_v58, %v512_v24 }
 0x173   :  { %v1758_v31 = vpop.f32.mrf.mxu0 }
 0x174   :  { %v526_v32 = vadd.f32 %v1758_v31, %v399_v59  ;;  %v633_v33 = vadd.f32 %v632_v62, %v505_v28  ;;  %v872_v34 = vpop.f32.mrf.mxu1 }
 0x175   :  { %v518_v13 = vpop.f32.mrf.mxu0 }
 0x176   :  { %v519_v36 = vadd.f32 %v518_v13, %v393_v63  ;;  %v657_v40 = vadd.f32 %v1778_v2, %v526_v32  ;;  %v1815_v22 = vpop.f32.mrf.mxu1 }
 0x177   :  { %v1761_v16 = vpop.f32.mrf.mxu0 }
 0x178   :  { %v540_v19 = vadd.f32 %v1761_v16, %v411_v3  ;;  %v649_v20 = vadd.f32 %v648_v7, %v519_v36  ;;  %v884_v45 = vpop.f32.mrf.mxu1 }
 0x179   :  { %v532_v38 = vpop.f32.mrf.mxu0 }
 0x17a   :  { %v533_v39 = vadd.f32 %v532_v38, %v405_v8  ;;  %v673_v41 = vadd.f32 %v1781_v14, %v540_v19  ;;  %v1818_v51 = vpop.f32.mrf.mxu1  ;;  %v1450_v19 = vld [vmem:[#allocation2 + $0x10] sm:$0xff] }
 0x17b   :  { %v1792_v21 = vpop.f32.mrf.mxu0 }
 0x17c   :  { %v762_v42 = vadd.f32 %v1792_v21, %v625_v15  ;;  %v2316_v44 = vadd.f32 %v664_v25, %v533_v39  ;;  %v896_v58 = vpop.f32.mrf.mxu1 }
 0x17d   :  { %v755_v46 = vpop.f32.mrf.mxu0 }
 0x17e   :  { %v756_v47 = vadd.f32 %v755_v46, %v617_v43  ;;  %v879_v48 = vadd.f32 %v1812_v29, %v762_v42  ;;  %v1821_v0 = vpop.f32.mrf.mxu1  ;;  %v1588_v42 = vld [vmem:[%s2404_s5] ss:$0 sm:$0xff] }
 0x17f   :  { %v1795_v18 = vpop.f32.mrf.mxu0 }
 0x180   :  { %v873_v49 = vadd.f32 %v872_v34, %v756_v47  ;;  %v774_v50 = vadd.f32 %v1795_v18, %v641_v30  ;;  %v908_v9 = vpop.f32.mrf.mxu1 }
 0x181   :  { %v767_v52 = vpop.f32.mrf.mxu0 }
 0x182   :  { %1919 = vtanh.f32 %v873_v49  ;;  %v768_v53 = vadd.f32 %v767_v52, %v633_v33  ;;  %v891_v55 = vadd.f32 %v1815_v22, %v774_v50  ;;  %v1448_v22 = vld [vmem:[#allocation2] sm:$0xff] }
 0x183   :  { %v1798_v56 = vpop.f32.mrf.mxu0 }
 0x184   :  { %v786_v57 = vadd.f32 %v1798_v56, %v657_v40  ;;  %v885_v14 = vadd.f32 %v884_v45, %v768_v53 }
 0x185   :  { %v779_v59 = vpop.f32.mrf.mxu0 }
 0x186   :  { %v780_v60 = vadd.f32 %v779_v59, %v649_v20  ;;  %v2318_v54 = vadd.f32 %v1818_v51, %v786_v57  ;;  %v1449_v20 = vld [vmem:[#allocation2 + $0x8] sm:$0xff] }
 0x187   :  { %v1801_v61 = vpop.f32.mrf.mxu0 }
 0x188   :  { %v798_v62 = vadd.f32 %v1801_v61, %v673_v41  ;;  %v2320_v63 = vadd.f32 %v896_v58, %v780_v60 }
 0x189   :  { %v2335_v3 = vpop.f32.mrf.mxu0 }
 0x18a   :  { %v2322_v1 = vadd.f32 %v1821_v0, %v798_v62 }
 0x18f   :  { %v1920_v2 = vpop.eup %1919 }
 0x190   :  { %1831 = vmatmul.mubr.msk.f32.vlgmr.msra.gmra.mxu0 %vm107_vm0, %v1920_v2 }
 0x191   :  { %1845 = vmatpush3.msra.mxu0 %v2276_v6  ;;  %1852 = vmatprep.mubr.msk.f32.mxu0 %vm1984_vm9, %v1983_v37 }
 0x192   :  { %1846 = vmatprep.subr.mxu0 %v1983_v37 }
 0x193   :  { %1847 = vmatpush3.msra.mxu0 %v2284_v10 }
 0x194   :  { %1848 = vmatprep.subr.mxu0 %v1983_v37 }
 0x195   :  { %1849 = vmatpush3.msra.mxu0 %v2294_v11 }
 0x196   :  { %1850 = vmatprep.subr.mxu0 %v1983_v37 }
 0x197   :  { %1851 = vmatpush3.msra.mxu0 %v2302_v12 }
 0x198   :  { %1866 = vmatprep.subr.mxu0 %v1983_v37 }
 0x250   :  { %v992_v4 = vpop.f32.mrf.mxu0 }
 0x251   :  { %v996_v5 = vadd.f32 %v992_v4, %v879_v48 }
 0x252   :  { %v1832_v7 = vpop.f32.mrf.mxu0 }
 0x253   :  { %1921 = vtanh.f32 %v996_v5 }
 0x260   :  { %v1922_v8 = vpop.eup %1921 }
 0x261   :  { %1842 = vmatmul.mubr.msk.f32.vlgmr.msra.gmra.mxu1 %vm107_vm0, %v1922_v8 }
 0x262   :  { %1856 = vmatpush3.msra.mxu1 %v2276_v6  ;;  %1863 = vmatprep.mubr.msk.f32.mxu1 %vm1984_vm9, %v1983_v37 }
 0x263   :  { %1857 = vmatprep.subr.mxu1 %v1983_v37 }
 0x264   :  { %1858 = vmatpush3.msra.mxu1 %v2284_v10 }
 0x265   :  { %1859 = vmatprep.subr.mxu1 %v1983_v37 }
 0x266   :  { %1860 = vmatpush3.msra.mxu1 %v2294_v11 }
 0x267   :  { %1861 = vmatprep.subr.mxu1 %v1983_v37 }
 0x268   :  { %1862 = vmatpush3.msra.mxu1 %v2302_v12 }
 0x269   :  { %1877 = vmatprep.subr.mxu1 %v1983_v37 }
 0x321   :  { %v1067_v15 = vpop.f32.mrf.mxu1 }
 0x322   :  { %v1071_v23 = vadd.f32 %v1067_v15, %v885_v14 }
 0x323   :  { %v1843_v24 = vpop.f32.mrf.mxu1 }
 0x324   :  { %1923 = vtanh.f32 %v1071_v23 }
 0x331   :  { %v1924_v25 = vpop.eup %1923 }
 0x332   :  { %1853 = vmatmul.mubr.msk.f32.vlgmr.msra.gmra.mxu0 %vm107_vm0, %v1924_v25 }
 0x333   :  { %1867 = vmatpush3.msra.mxu0 %v2276_v6  ;;  %1874 = vmatprep.mubr.msk.f32.mxu0 %vm1984_vm9, %v1983_v37 }
 0x334   :  { %1868 = vmatprep.subr.mxu0 %v1983_v37 }
 0x335   :  { %1869 = vmatpush3.msra.mxu0 %v2284_v10 }
 0x336   :  { %1870 = vmatprep.subr.mxu0 %v1983_v37 }
 0x337   :  { %1871 = vmatpush3.msra.mxu0 %v2294_v11 }
 0x338   :  { %1872 = vmatprep.subr.mxu0 %v1983_v37 }
 0x339   :  { %1873 = vmatpush3.msra.mxu0 %v2302_v12 }
 0x33a   :  { %1888 = vmatprep.subr.mxu0 %v1983_v37 }
 0x3f2   :  { %v1142_v26 = vpop.f32.mrf.mxu0 }
 0x3f3   :  { %v1146_v27 = vadd.f32 %v1142_v26, %v891_v55 }
 0x3f4   :  { %v1854_v28 = vpop.f32.mrf.mxu0 }
 0x3f5   :  { %1925 = vtanh.f32 %v1146_v27 }
 0x402   :  { %v1926_v29 = vpop.eup %1925 }
 0x403   :  { %1864 = vmatmul.mubr.msk.f32.vlgmr.msra.gmra.mxu1 %vm107_vm0, %v1926_v29 }
 0x404   :  { %1878 = vmatpush3.msra.mxu1 %v2276_v6  ;;  %1885 = vmatprep.mubr.msk.f32.mxu1 %vm1984_vm9, %v1983_v37 }
 0x405   :  { %1879 = vmatprep.subr.mxu1 %v1983_v37 }
 0x406   :  { %1880 = vmatpush3.msra.mxu1 %v2284_v10 }
 0x407   :  { %1881 = vmatprep.subr.mxu1 %v1983_v37 }
 0x408   :  { %1882 = vmatpush3.msra.mxu1 %v2294_v11 }
 0x409   :  { %1883 = vmatprep.subr.mxu1 %v1983_v37 }
 0x40a   :  { %1884 = vmatpush3.msra.mxu1 %v2302_v12 }
 0x40b   :  { %1899 = vmatprep.subr.mxu1 %v1983_v37 }
 0x4c3   :  { %v1217_v30 = vpop.f32.mrf.mxu1 }
 0x4c4   :  { %v1221_v31 = vadd.f32 %v1217_v30, %v2320_v63 }
 0x4c5   :  { %v1865_v32 = vpop.f32.mrf.mxu1 }
 0x4c6   :  { %1927 = vtanh.f32 %v1221_v31 }
 0x4d3   :  { %v1928_v33 = vpop.eup %1927 }
 0x4d4   :  { %1875 = vmatmul.mubr.msk.f32.vlgmr.msra.gmra.mxu0 %vm107_vm0, %v1928_v33 }
 0x4d5   :  { %1889 = vmatpush3.msra.mxu0 %v2276_v6  ;;  %1896 = vmatprep.mubr.msk.f32.mxu0 %vm1984_vm9, %v1983_v37 }
 0x4d6   :  { %1890 = vmatprep.subr.mxu0 %v1983_v37 }
 0x4d7   :  { %1891 = vmatpush3.msra.mxu0 %v2284_v10  ;;  %v792_v10 = vadd.f32 %v2335_v3, %v2316_v44 }
 0x4d8   :  { %1892 = vmatprep.subr.mxu0 %v1983_v37 }
 0x4d9   :  { %1893 = vmatpush3.msra.mxu0 %v2294_v11  ;;  %v909_v36 = vadd.f32 %v908_v9, %v792_v10 }
 0x4da   :  { %1894 = vmatprep.subr.mxu0 %v1983_v37 }
 0x4db   :  { %1895 = vmatpush3.msra.mxu0 %v2302_v12 }
 0x594   :  { %v1292_v34 = vpop.f32.mrf.mxu0 }
 0x595   :  { %v1296_v13 = vadd.f32 %v1292_v34, %v2318_v54 }
 0x596   :  { %v1876_v35 = vpop.f32.mrf.mxu0 }
 0x597   :  { %1929 = vtanh.f32 %v1296_v13 }
 0x5a4   :  { %v1930_v6 = vpop.eup %1929 }
 0x5a5   :  { %1886 = vmatmul.mubr.msk.f32.vlgmr.msra.gmra.mxu1 %vm107_vm0, %v1930_v6 }
 0x5a6   :  { %1907 = vmatprep.mubr.msk.f32.mxu1 %vm1984_vm9, %v1983_v37  ;;  %1900 = vmatpush3.msra.mxu1 %v1451_v17 }
 0x5a7   :  { %1901 = vmatprep.subr.mxu1 %v1983_v37 }
 0x5a8   :  { %1902 = vmatpush3.msra.mxu1 %v1450_v19 }
 0x5a9   :  { %1903 = vmatprep.subr.mxu1 %v1983_v37 }
 0x5aa   :  { %1904 = vmatpush3.msra.mxu1 %v1449_v20 }
 0x5ab   :  { %1905 = vmatprep.subr.mxu1 %v1983_v37 }
 0x5ac   :  { %1906 = vmatpush3.msra.mxu1 %v1448_v22 }
 0x665   :  { %v1367_v11 = vpop.f32.mrf.mxu1 }
 0x666   :  { %v1371_v40 = vadd.f32 %v1367_v11, %v909_v36 }
 0x667   :  { %v1887_v16 = vpop.f32.mrf.mxu1 }
 0x668   :  { %1931 = vtanh.f32 %v1371_v40 }
 0x675   :  { %v1932_v12 = vpop.eup %1931 }
 0x676   :  { %1897 = vmatmul.mubr.msk.f32.vlgmr.msra.gmra.mxu0 %vm107_vm0, %v1932_v12 }
 0x736   :  { %v1442_v38 = vpop.f32.mrf.mxu0 }
 0x737   :  { %v1446_v39 = vadd.f32 %v1442_v38, %v2322_v1 }
 0x738   :  { %v1898_v41 = vpop.f32.mrf.mxu0 }
 0x739   :  { %1933 = vtanh.f32 %v1446_v39 }
 0x746   :  { %v1934_v21 = vpop.eup %1933 }
 0x747   :  { %1908 = vmatmul.mubr.msk.f32.vlgmr.msra.gmra.mxu1 %vm107_vm0, %v1934_v21 }
 0x807   :  { %v1528_v43 = vpop.f32.mrf.mxu1 }
 0x808   :  { %v1529_v44 = vadd.f32 %v1588_v42, %v1528_v43 }
 0x809   :  { %v1909_v45 = vpop.f32.mrf.mxu1 }
 0x80a   :  { %1532 = vst [vmem:[#allocation5] sm:$0xff] %v1529_v44 }
 0x80b   :  { %1966 = shalt.err (!%p1963_p9)
}
 0x80c   :  { %1542 = dma.vmem_to_hbm [thread:$0]  %s1540_s11, 128, %s2405_s6, [#allocation4]  }
 0x80d   :  { %1977 = dma.done.wait [#allocation4], 128  }
 0x80e   :  { %1978 = vsyncadd [#allocation4], 4294967168 }
 0x80f   :  { %1546 = vsyncpa [#allocation3], 1 }
 0x810   :  { %1547 = vsyncpa [#allocation4], 1 }

</bundles_post_ra>
